<compile_context>
chip_gen: v7x
topology: tpu7x:2x2x1
jax: 0.10.0
libtpu: 0.0.40
codegen_flags: <defaults>
</compile_context>

<pallas_src>
import functools

import jax
import jax.numpy as jnp
import numpy as np
from jax.experimental import pallas as pl
from jax.experimental.pallas import tpu as pltpu


def _round_up(x, m):
    return ((x + m - 1) // m) * m


def _vmem_capacity_bytes():
    """Physical VMEM of the attached TPU; conservative 64 MiB (v7x) fallback."""
    try:
        info = pltpu.get_tpu_info()
        cap = getattr(info, "vmem_capacity_bytes", None)
        if cap:
            return int(cap)
    except Exception:
        pass
    return 64 * 1024 * 1024


def _choose_f_tiling(F):
    """Largest lane-dense (128-multiple) F tile <= 512; pad F when no divisor exists."""
    if F <= 512:
        return F, F
    for tf in (512, 384, 256, 128):
        if F % tf == 0:
            return tf, F
    Fp = _round_up(F, 512)
    return 512, Fp


def _ffn_vmem_bytes(tm, tf, H):
    # bf16 blocks, 2-deep pipeline each: x(tm,H), w1(H,tf), w2(tf,H), gelu(tm,tf), y(tm,H)
    per = (tm * H + H * tf + tf * H + tm * tf + tm * H) * 2
    return 2 * per


def _pick_tm(S, H, tf, vmem_cap):
    """Biggest row tile (>=128) whose pipelined buffer set fits ~70% of VMEM."""
    budget = int(vmem_cap * 0.7)
    tm = 128
    for cand in (512, 384, 256, 128):
        if _ffn_vmem_bytes(cand, tf, H) <= budget:
            tm = cand
            break
    # never below 128; don't blow the row tile far beyond the real amount of work
    return max(128, min(tm, max(128, _round_up(S, 128))))


# ----------------------------------------------------------------------------
# Kernel 1: router — logits = x @ Wr (lane-dense padded), masked softmax.
# Token-tiled ("parallel") so realistic (T, H) never stages the full activation in VMEM.
# ----------------------------------------------------------------------------
def _router_kernel(x_ref, wr_ref, probs_ref, *, n_experts, use_bf16):
    x = x_ref[...]
    w = wr_ref[...]
    if use_bf16:
        x = x.astype(jnp.bfloat16)
        w = w.astype(jnp.bfloat16)
    logits = jnp.dot(x, w, preferred_element_type=jnp.float32)
    col = jax.lax.broadcasted_iota(jnp.int32, logits.shape, 1)
    logits = jnp.where(col < n_experts, logits, -1e30)
    logits = logits - jnp.max(logits, axis=-1, keepdims=True)
    p = jnp.exp(logits)
    probs_ref[...] = p / jnp.sum(p, axis=-1, keepdims=True)


def router_probs(x, wr_pad, *, n_experts, tile_t=256, router_bf16=False):
    # router_bf16=True runs the logits matmul on the MXU in bf16 (~3-4x faster) but can
    # flip borderline top-k ties vs an f32 reference; keep f32 by default for parity.
    T, H = x.shape
    EP = wr_pad.shape[1]
    tt = min(tile_t, max(8, _round_up(T, 8)))
    Tp = _round_up(T, tt)
    if Tp != T:
        x = jnp.pad(x, ((0, Tp - T), (0, 0)))
    kernel = functools.partial(_router_kernel, n_experts=n_experts, use_bf16=router_bf16)
    out = pl.pallas_call(
        kernel,
        out_shape=jax.ShapeDtypeStruct((Tp, EP), jnp.float32),
        grid=(Tp // tt,),
        in_specs=[
            pl.BlockSpec((tt, H), lambda i: (i, 0)),
            pl.BlockSpec((H, EP), lambda i: (0, 0)),
        ],
        out_specs=pl.BlockSpec((tt, EP), lambda i: (i, 0)),
        compiler_params=pltpu.CompilerParams(dimension_semantics=("parallel",)),
    )(x, wr_pad)
    return out[:T]


# ----------------------------------------------------------------------------
# Kernel 2: grouped expert FFN (GEMM1 -> GELU -> GEMM2).
# Grid = (row_tiles [parallel], F_tiles [arbitrary]); rows are pre-sorted by expert and
# each row tile belongs to exactly one expert (groups padded to a tile multiple).
# tile_expert / tile_valid are scalar-prefetched (weight index_maps / compute skip).
# ----------------------------------------------------------------------------
def _grouped_ffn_kernel(te_ref, tv_ref, x_ref, w1_ref, w2_ref, gelu_ref, y_ref):
    del te_ref  # consumed only by the weight index_maps
    i = pl.program_id(0)
    j = pl.program_id(1)

    # Skip fully-padding row tiles: no MXU/VPU/EUP work (weight DMA still happens).
    # Their output rows are garbage but the wrapper combine drops them.
    @pl.when(tv_ref[i] > 0)
    def _():
        x = x_ref[...]                      # (tm, H)  bf16
        w1 = w1_ref[0]                      # (H, tf)  bf16
        w2 = w2_ref[0]                      # (tf, H)  bf16

        h = jnp.dot(x, w1, preferred_element_type=jnp.float32)      # (tm, tf) f32
        # TODO(synk): config.activation_func unspecified in the harness; tanh-approx GELU.
        g = jax.nn.gelu(h, approximate=True)                        # f32 GELU math
        g_b = g.astype(jnp.bfloat16)
        gelu_ref[...] = g_b

        y2 = jnp.dot(g_b, w2, preferred_element_type=jnp.float32)   # (tm, H) f32

        # y's out block index is (i, 0): VMEM-resident across the F axis, so accumulate
        # directly into it (no separate f32 scratch). Partials are f32 on the MXU and
        # rounded to bf16 at each accumulate step.
        @pl.when(j == 0)
        def _():
            y_ref[...] = y2.astype(y_ref.dtype)

        @pl.when(j > 0)
        def _():
            y_ref[...] = (y_ref[...].astype(jnp.float32) + y2).astype(y_ref.dtype)


def grouped_expert_ffn(tile_expert, tile_valid, x_grouped, w1, w2, *, tm, tf,
                       vmem_limit_bytes):
    P, H = x_grouped.shape
    E, _, Fp = w1.shape
    num_f = Fp // tf
    num_m = P // tm

    flops = 4 * P * H * Fp                                  # two GEMMs (2*M*N*K each)
    bytes_accessed = (P * H + P * Fp + P * H) * 2 + num_m * num_f * (2 * H * tf) * 2
    cost = pl.CostEstimate(flops=flops, transcendentals=P * Fp,
                           bytes_accessed=bytes_accessed)

    return pl.pallas_call(
        _grouped_ffn_kernel,
        out_shape=(
            jax.ShapeDtypeStruct((P, Fp), jnp.bfloat16),    # grouped gelu_output
            jax.ShapeDtypeStruct((P, H), jnp.bfloat16),     # grouped GEMM2 output
        ),
        grid_spec=pltpu.PrefetchScalarGridSpec(
            num_scalar_prefetch=2,
            grid=(num_m, num_f),
            in_specs=[
                pl.BlockSpec((tm, H), lambda i, j, te, tv: (i, 0)),
                # TODO(synk): on v7x, fp8 expert weights (per-expert/channel scales) would
                # halve the dominant weight DMA; kept bf16 here for portability.
                pl.BlockSpec((1, H, tf), lambda i, j, te, tv: (te[i], 0, j)),
                pl.BlockSpec((1, tf, H), lambda i, j, te, tv: (te[i], j, 0)),
            ],
            out_specs=(
                pl.BlockSpec((tm, tf), lambda i, j, te, tv: (i, j)),
                pl.BlockSpec((tm, H), lambda i, j, te, tv: (i, 0)),
            ),
        ),
        compiler_params=pltpu.CompilerParams(
            dimension_semantics=("parallel", "arbitrary"),
            vmem_limit_bytes=vmem_limit_bytes,
        ),
        cost_estimate=cost,
    )(tile_expert, tile_valid, x_grouped, w1, w2)


# ----------------------------------------------------------------------------
# Full forward (mirrors MoE_layer_flux.forward, single device)
# ----------------------------------------------------------------------------
def moe_layer_forward(x_tokens, router_w, w1, w2, *, topk):
    T, H = x_tokens.shape
    E = router_w.shape[1]
    F = w1.shape[2]
    S = T * topk                              # number of dispatched slots

    # --- per-generation tiling / VMEM budget ---
    vmem_cap = _vmem_capacity_bytes()
    tf, Fp = _choose_f_tiling(F)
    tm = _pick_tm(S, H, tf, vmem_cap)
    vmem_limit = max(32 * 2**20, min(int(vmem_cap * 0.85), 112 * 2**20))

    if Fp != F:
        w1 = jnp.pad(w1, ((0, 0), (0, 0), (0, Fp - F)))
        w2 = jnp.pad(w2, ((0, 0), (0, Fp - F), (0, 0)))

    # --- router (lane-dense padded logits, token-tiled) ---
    EP = _round_up(E, 128)
    wr_pad = jnp.pad(router_w, ((0, 0), (0, EP - E)))
    probs_pad = router_probs(x_tokens, wr_pad, n_experts=E)              # (T, EP)
    probs = probs_pad[:, :E]
    _top_p, top_idx = jax.lax.top_k(probs, topk)                          # (T, topk)

    # --- dispatch metadata: slot-major slot s = k*T + t, grouped by expert, tm-aligned ---
    expert_ids = jnp.transpose(top_idx).reshape(-1).astype(jnp.int32)     # (S,)
    token_ids = jnp.tile(jnp.arange(T, dtype=jnp.int32), topk)            # (S,)

    order = jnp.argsort(expert_ids)
    sorted_experts = expert_ids[order]
    sorted_tokens = token_ids[order]

    counts = jnp.sum(jax.nn.one_hot(expert_ids, E, dtype=jnp.int32), axis=0)   # (E,)
    padded_counts = ((counts + tm - 1) // tm) * tm
    group_end = jnp.cumsum(padded_counts).astype(jnp.int32)
    group_start = jnp.concatenate([jnp.zeros((1,), jnp.int32), group_end[:-1]])
    unpadded_start = jnp.concatenate(
        [jnp.zeros((1,), jnp.int32), jnp.cumsum(counts)[:-1].astype(jnp.int32)])
    rank_in_group = jnp.arange(S, dtype=jnp.int32) - unpadded_start[sorted_experts]
    dest = group_start[sorted_experts] + rank_in_group                    # (S,)

    P = _round_up(S, tm) + E * tm             # static upper bound on padded total
    num_row_tiles = P // tm

    # padded position -> source token row (row T = appended zero row / dropped slot)
    row_gather = jnp.full((P,), T, dtype=jnp.int32).at[dest].set(sorted_tokens)
    # slot-major slot -> padded position (to un-permute gelu_output)
    pos_of_slot = jnp.zeros((S,), dtype=jnp.int32).at[order].set(dest)

    # per row-tile expert id (each tile lies fully inside one expert group) + validity
    tile_start = jnp.arange(num_row_tiles, dtype=jnp.int32) * tm
    tile_expert = jnp.minimum(
        jnp.searchsorted(group_end, tile_start, side="right"), E - 1).astype(jnp.int32)
    tile_valid = (tile_start
                  < group_start[tile_expert] + counts[tile_expert]).astype(jnp.int32)

    # --- build grouped (dispatched) input once, in bf16; padded rows are exact zeros ---
    # TODO(synk): this (P,H) gather could be fused into the FFN kernel via
    # memory_space=pl.ANY + per-row make_async_copy on a scalar-prefetched row_gather.
    x_pad = jnp.concatenate([x_tokens, jnp.zeros((1, H), x_tokens.dtype)], axis=0)
    x_grouped = x_pad[row_gather].astype(jnp.bfloat16)                    # (P, H)

    gelu_padded, y_padded = grouped_expert_ffn(
        tile_expert, tile_valid, x_grouped,
        w1.astype(jnp.bfloat16), w2.astype(jnp.bfloat16),
        tm=tm, tf=tf, vmem_limit_bytes=vmem_limit)

    # --- combine (flux GatherRS, single device): segment-sum over token id on grouped y.
    # Padding / skipped rows map to segment T and are sliced off.
    mlp_output = jnp.zeros((T + 1, H), jnp.float32).at[row_gather].add(
        y_padded.astype(jnp.float32))[:T]                                 # (T, H) f32

    # flux 'outputs' buffer (returned as gelu_output) in slot-major dispatched layout
    gelu_output = gelu_padded[pos_of_slot]                                # (S, Fp) bf16
    if Fp != F:
        gelu_output = gelu_output[:, :F]

    return mlp_output, gelu_output


# pure-JAX reference (same bf16 rounding points) for a sanity check
def _ref_forward(x, wr, w1, w2, topk):
    probs_full = jax.nn.softmax(x @ wr, axis=-1)
    _p, idx = jax.lax.top_k(probs_full, topk)
    T, H = x.shape
    x_disp = jnp.tile(x, (topk, 1)).astype(jnp.bfloat16).astype(jnp.float32)
    eids = jnp.transpose(idx).reshape(-1)
    w1e = w1[eids].astype(jnp.bfloat16).astype(jnp.float32)
    w2e = w2[eids].astype(jnp.bfloat16).astype(jnp.float32)
    h = jnp.einsum("nh,nhf->nf", x_disp, w1e)
    g = jax.nn.gelu(h, approximate=True)
    y = jnp.einsum("nf,nfh->nh", g.astype(jnp.bfloat16).astype(jnp.float32), w2e)
    mlp = y.reshape(topk, T, H).sum(axis=0)
    return mlp, g


if __name__ == "__main__":
    # small shapes consistent with the module (args.*):
    batch_size = 2          # args.batch_size
    num_tokens = 8          # args.num_tokens (WORLD_SIZE == 1)
    hidden = 32             # args.hidden_size
    ffn = 64                # args.model_dim (ffn_hidden)
    num_experts = 4         # args.num_moe_experts
    topk = 2                # args.topk

    T = num_tokens * batch_size

    key = jax.random.PRNGKey(0)
    kx, kr, k1, k2 = jax.random.split(key, 4)
    # reshaped_tensor: (num_tokens // WORLD_SIZE, batch, hidden) -> flatten to (T, hidden)
    x = jax.random.normal(kx, (num_tokens, batch_size, hidden), dtype=jnp.float32)
    x_tokens = x.reshape(T, hidden)

    router_w = 0.02 * jax.random.normal(kr, (hidden, num_experts), dtype=jnp.float32)
    w1 = 0.02 * jax.random.normal(k1, (num_experts, hidden, ffn), dtype=jnp.float32)
    w2 = 0.02 * jax.random.normal(k2, (num_experts, ffn, hidden), dtype=jnp.float32)

    fwd = jax.jit(functools.partial(moe_layer_forward, topk=topk))
    mlp_out, gelu_out = fwd(x_tokens, router_w, w1, w2)
    jax.block_until_ready((mlp_out, gelu_out))

    ref_mlp, ref_gelu = _ref_forward(x_tokens, router_w, w1, w2, topk)
    np.testing.assert_allclose(np.asarray(mlp_out, dtype=np.float32),
                               np.asarray(ref_mlp), rtol=2e-2, atol=2e-2)
    np.testing.assert_allclose(np.asarray(gelu_out.astype(jnp.float32)),
                               np.asarray(ref_gelu), rtol=2e-2, atol=2e-2)

    print("KERNEL_OK")
</pallas_src>

<mosaic_0001>
module attributes {stable_mosaic.version = 11 : i64} {
  func.func @_router_kernel(%arg0: i32, %arg1: memref<16x32xf32, #tpu.memory_space<vmem>>, %arg2: memref<32x128xf32, #tpu.memory_space<vmem>>, %arg3: memref<16x128xf32, #tpu.memory_space<vmem>>) attributes {dimension_semantics = [#tpu.dimension_semantics<parallel>], iteration_bounds = array<i64: 1>, scalar_prefetch = 0 : i64, scratch_operands = 0 : i64, tpu.core_type = #tpu.core_type<tc>, window_params = [{transform_indices = @transform_0, window_bounds = array<i64: 16, 32>}, {pipeline_mode = #tpu.pipeline_mode<synchronous>, transform_indices = @transform_1, window_bounds = array<i64: 32, 128>}, {transform_indices = @transform_2, window_bounds = array<i64: 16, 128>}]} {
    %c0 = arith.constant 0 : index
    %c0_0 = arith.constant 0 : index
    %0 = vector.load %arg1[%c0, %c0_0] : memref<16x32xf32, #tpu.memory_space<vmem>>, vector<16x32xf32>
    %c0_1 = arith.constant 0 : index
    %c0_2 = arith.constant 0 : index
    %1 = vector.load %arg2[%c0_1, %c0_2] : memref<32x128xf32, #tpu.memory_space<vmem>>, vector<32x128xf32>
    %cst = arith.constant dense<0.000000e+00> : vector<16x128xf32>
    %2 = tpu.matmul %0, %1, %cst {dimension_numbers = #tpu.dot_dimension_numbers<[1], [0], [0], [1], [0, 0, 1, 1], [], []>} : vector<16x32xf32>, vector<32x128xf32>, vector<16x128xf32> -> vector<16x128xf32>
    %3 = tpu.iota {dimensions = array<i32: 1>} : vector<16x128xi32>
    %c4_i32 = arith.constant 4 : i32
    %4 = vector.broadcast %c4_i32 : i32 to vector<16x128xi32>
    %5 = arith.cmpi slt, %3, %4 : vector<16x128xi32>
    %cst_3 = arith.constant -1.000000e+30 : f32
    %6 = vector.broadcast %cst_3 : f32 to vector<16x128xf32>
    %7 = arith.select %5, %2, %6 : vector<16x128xi1>, vector<16x128xf32>
    %cst_4 = arith.constant dense<0xFF800000> : vector<16xf32>
    %8 = vector.multi_reduction <maximumf>, %7, %cst_4 [1] : vector<16x128xf32> to vector<16xf32>
    %9 = vector.shape_cast %8 : vector<16xf32> to vector<16x1xf32>
    %10 = vector.broadcast %9 : vector<16x1xf32> to vector<16x128xf32>
    %11 = arith.subf %7, %10 : vector<16x128xf32>
    %12 = math.exp %11 : vector<16x128xf32>
    %cst_5 = arith.constant dense<0.000000e+00> : vector<16xf32>
    %13 = vector.multi_reduction <add>, %12, %cst_5 [1] : vector<16x128xf32> to vector<16xf32>
    %14 = vector.shape_cast %13 : vector<16xf32> to vector<16x1xf32>
    %15 = vector.broadcast %14 : vector<16x1xf32> to vector<16x128xf32>
    %16 = arith.divf %12, %15 : vector<16x128xf32>
    %c0_6 = arith.constant 0 : index
    %c0_7 = arith.constant 0 : index
    %17 = vector.load %arg3[%c0_6, %c0_7] : memref<16x128xf32, #tpu.memory_space<vmem>>, vector<16x128xf32>
    tpu.vector_store %arg3[%c0_6, %c0_7], %16 {strides = array<i32>} : memref<16x128xf32, #tpu.memory_space<vmem>>, vector<16x128xf32>,
    return
  }
  func.func @transform_0(%arg0: i32) -> (i32, i32) {
    %c0_i32 = arith.constant 0 : i32
    %c0_i32_0 = arith.constant 0 : i32
    return %arg0, %c0_i32 : i32, i32
  }
  func.func @transform_1(%arg0: i32) -> (i32, i32) {
    %c0_i32 = arith.constant 0 : i32
    %c0_i32_0 = arith.constant 0 : i32
    %c0_i32_1 = arith.constant 0 : i32
    return %c0_i32, %c0_i32_0 : i32, i32
  }
  func.func @transform_2(%arg0: i32) -> (i32, i32) {
    %c0_i32 = arith.constant 0 : i32
    %c0_i32_0 = arith.constant 0 : i32
    return %arg0, %c0_i32 : i32, i32
  }
}

module attributes {stable_mosaic.version = 11 : i64} {
  func.func @_grouped_ffn_kernel(%arg0: i32, %arg1: i32, %arg2: memref<5xi32, #tpu.memory_space<smem>>, %arg3: memref<5xi32, #tpu.memory_space<smem>>, %arg4: memref<128x32xbf16, #tpu.memory_space<vmem>>, %arg5: memref<1x32x64xbf16, #tpu.memory_space<vmem>>, %arg6: memref<1x64x32xbf16, #tpu.memory_space<vmem>>, %arg7: memref<128x64xbf16, #tpu.memory_space<vmem>>, %arg8: memref<128x32xbf16, #tpu.memory_space<vmem>>) attributes {dimension_semantics = [#tpu.dimension_semantics<parallel>, #tpu.dimension_semantics<arbitrary>], iteration_bounds = array<i64: 5, 1>, scalar_prefetch = 2 : i64, scratch_operands = 0 : i64, tpu.core_type = #tpu.core_type<tc>, window_params = [{transform_indices = @transform_0, window_bounds = array<i64: 128, 32>}, {transform_indices = @transform_1, window_bounds = array<i64: 1, 32, 64>}, {transform_indices = @transform_2, window_bounds = array<i64: 1, 64, 32>}, {transform_indices = @transform_3, window_bounds = array<i64: 128, 64>}, {transform_indices = @transform_4, window_bounds = array<i64: 128, 32>}]} {
    %0 = arith.index_cast %arg0 : i32 to index
    %1 = memref.load %arg3[%0] : memref<5xi32, #tpu.memory_space<smem>>
    %c0_i32 = arith.constant 0 : i32
    %2 = arith.cmpi sgt, %1, %c0_i32 : i32
    %3 = arith.extui %2 : i1 to i32
    %c0_i32_0 = arith.constant 0 : i32
    %4 = arith.cmpi ne, %3, %c0_i32_0 : i32
    scf.if %4 {
      %c0 = arith.constant 0 : index
      %c0_1 = arith.constant 0 : index
      %5 = vector.load %arg4[%c0, %c0_1] : memref<128x32xbf16, #tpu.memory_space<vmem>>, vector<128x32xbf16>
      %c0_2 = arith.constant 0 : index
      %c0_3 = arith.constant 0 : index
      %c0_4 = arith.constant 0 : index
      %6 = vector.load %arg5[%c0_2, %c0_3, %c0_4] : memref<1x32x64xbf16, #tpu.memory_space<vmem>>, vector<1x32x64xbf16>
      %7 = vector.shape_cast %6 : vector<1x32x64xbf16> to vector<32x64xbf16>
      %c0_5 = arith.constant 0 : index
      %c0_6 = arith.constant 0 : index
      %c0_7 = arith.constant 0 : index
      %8 = vector.load %arg6[%c0_5, %c0_6, %c0_7] : memref<1x64x32xbf16, #tpu.memory_space<vmem>>, vector<1x64x32xbf16>
      %9 = vector.shape_cast %8 : vector<1x64x32xbf16> to vector<64x32xbf16>
      %cst = arith.constant dense<0.000000e+00> : vector<128x64xf32>
      %10 = tpu.matmul %5, %7, %cst {dimension_numbers = #tpu.dot_dimension_numbers<[1], [0], [0], [1], [0, 0, 1, 1], [], []>} : vector<128x32xbf16>, vector<32x64xbf16>, vector<128x64xf32> -> vector<128x64xf32>
      %11 = arith.mulf %10, %10 : vector<128x64xf32>
      %12 = arith.mulf %10, %11 : vector<128x64xf32>
      %cst_8 = arith.constant 4.471500e-02 : f32
      %13 = vector.broadcast %cst_8 : f32 to vector<128x64xf32>
      %14 = arith.mulf %13, %12 : vector<128x64xf32>
      %15 = arith.addf %10, %14 : vector<128x64xf32>
      %cst_9 = arith.constant 0.797884583 : f32
      %16 = vector.broadcast %cst_9 : f32 to vector<128x64xf32>
      %17 = arith.mulf %16, %15 : vector<128x64xf32>
      %18 = math.tanh %17 : vector<128x64xf32>
      %cst_10 = arith.constant 1.000000e+00 : f32
      %19 = vector.broadcast %cst_10 : f32 to vector<128x64xf32>
      %20 = arith.addf %19, %18 : vector<128x64xf32>
      %cst_11 = arith.constant 5.000000e-01 : f32
      %21 = vector.broadcast %cst_11 : f32 to vector<128x64xf32>
      %22 = arith.mulf %21, %20 : vector<128x64xf32>
      %23 = arith.mulf %10, %22 : vector<128x64xf32>
      %24 = arith.truncf %23 : vector<128x64xf32> to vector<128x64xbf16>
      %c0_12 = arith.constant 0 : index
      %c0_13 = arith.constant 0 : index
      %25 = vector.load %arg7[%c0_12, %c0_13] : memref<128x64xbf16, #tpu.memory_space<vmem>>, vector<128x64xbf16>
      tpu.vector_store %arg7[%c0_12, %c0_13], %24 {strides = array<i32>} : memref<128x64xbf16, #tpu.memory_space<vmem>>, vector<128x64xbf16>,
      %cst_14 = arith.constant dense<0.000000e+00> : vector<128x32xf32>
      %26 = tpu.matmul %24, %9, %cst_14 {dimension_numbers = #tpu.dot_dimension_numbers<[1], [0], [0], [1], [0, 0, 1, 1], [], []>} : vector<128x64xbf16>, vector<64x32xbf16>, vector<128x32xf32> -> vector<128x32xf32>
      %c0_i32_15 = arith.constant 0 : i32
      %27 = arith.cmpi eq, %arg1, %c0_i32_15 : i32
      %28 = arith.extui %27 : i1 to i32
      %c0_i32_16 = arith.constant 0 : i32
      %29 = arith.cmpi ne, %28, %c0_i32_16 : i32
      scf.if %29 {
        %33 = arith.truncf %26 : vector<128x32xf32> to vector<128x32xbf16>
        %c0_19 = arith.constant 0 : index
        %c0_20 = arith.constant 0 : index
        %34 = vector.load %arg8[%c0_19, %c0_20] : memref<128x32xbf16, #tpu.memory_space<vmem>>, vector<128x32xbf16>
        tpu.vector_store %arg8[%c0_19, %c0_20], %33 {strides = array<i32>} : memref<128x32xbf16, #tpu.memory_space<vmem>>, vector<128x32xbf16>,
      } else {
      }
      %c0_i32_17 = arith.constant 0 : i32
      %30 = arith.cmpi sgt, %arg1, %c0_i32_17 : i32
      %31 = arith.extui %30 : i1 to i32
      %c0_i32_18 = arith.constant 0 : i32
      %32 = arith.cmpi ne, %31, %c0_i32_18 : i32
      scf.if %32 {
        %c0_19 = arith.constant 0 : index
        %c0_20 = arith.constant 0 : index
        %33 = vector.load %arg8[%c0_19, %c0_20] : memref<128x32xbf16, #tpu.memory_space<vmem>>, vector<128x32xbf16>
        %34 = arith.extf %33 : vector<128x32xbf16> to vector<128x32xf32>
        %35 = arith.addf %34, %26 : vector<128x32xf32>
        %36 = arith.truncf %35 : vector<128x32xf32> to vector<128x32xbf16>
        %c0_21 = arith.constant 0 : index
        %c0_22 = arith.constant 0 : index
        %37 = vector.load %arg8[%c0_21, %c0_22] : memref<128x32xbf16, #tpu.memory_space<vmem>>, vector<128x32xbf16>
        tpu.vector_store %arg8[%c0_21, %c0_22], %36 {strides = array<i32>} : memref<128x32xbf16, #tpu.memory_space<vmem>>, vector<128x32xbf16>,
      } else {
      }
    } else {
    }
    return
  }
  func.func @transform_0(%arg0: i32, %arg1: i32, %arg2: memref<5xi32, #tpu.memory_space<smem>>, %arg3: memref<5xi32, #tpu.memory_space<smem>>) -> (i32, i32) {
    %c0_i32 = arith.constant 0 : i32
    %c0_i32_0 = arith.constant 0 : i32
    return %arg0, %c0_i32 : i32, i32
  }
  func.func @transform_1(%arg0: i32, %arg1: i32, %arg2: memref<5xi32, #tpu.memory_space<smem>>, %arg3: memref<5xi32, #tpu.memory_space<smem>>) -> (i32, i32, i32) {
    %0 = arith.index_cast %arg0 : i32 to index
    %1 = memref.load %arg2[%0] : memref<5xi32, #tpu.memory_space<smem>>
    %c0_i32 = arith.constant 0 : i32
    %c0_i32_0 = arith.constant 0 : i32
    return %1, %c0_i32, %arg1 : i32, i32, i32
  }
  func.func @transform_2(%arg0: i32, %arg1: i32, %arg2: memref<5xi32, #tpu.memory_space<smem>>, %arg3: memref<5xi32, #tpu.memory_space<smem>>) -> (i32, i32, i32) {
    %0 = arith.index_cast %arg0 : i32 to index
    %1 = memref.load %arg2[%0] : memref<5xi32, #tpu.memory_space<smem>>
    %c0_i32 = arith.constant 0 : i32
    %c0_i32_0 = arith.constant 0 : i32
    return %1, %arg1, %c0_i32 : i32, i32, i32
  }
  func.func @transform_3(%arg0: i32, %arg1: i32, %arg2: memref<5xi32, #tpu.memory_space<smem>>, %arg3: memref<5xi32, #tpu.memory_space<smem>>) -> (i32, i32) {
    %c0_i32 = arith.constant 0 : i32
    return %arg0, %arg1 : i32, i32
  }
  func.func @transform_4(%arg0: i32, %arg1: i32, %arg2: memref<5xi32, #tpu.memory_space<smem>>, %arg3: memref<5xi32, #tpu.memory_space<smem>>) -> (i32, i32) {
    %c0_i32 = arith.constant 0 : i32
    %c0_i32_0 = arith.constant 0 : i32
    return %arg0, %c0_i32 : i32, i32
  }
}

</mosaic_0001>

<bundles_post_ra>
// kernel: eq.1
= control target key start
LH: loop header
LB: loop body
LE: loop exit
PB: predicated region body
PF: predicated region fallthrough
CT: control target
= control target key end

     0   :  { %vm7_vm0 = vcmask 130048   ;;  %vm13_vm1 = vcmask 261248   ;;  %s39_s0 = inlined_call_operand.vmem [shape: s32[2,16], index: 0, kind: input, shape index: {}]   ;;  %s40_s1 = inlined_call_operand.vmem [shape: s32[32], index: 1, kind: output, shape index: {}]  }
   0x1   :  { %v4_v0 = vld [vmem:[%s39_s0] sm:$0x3]  ;;  %s22_s0 = smov 16  }
   0x2   :  { %5 = vst [vmem:[#allocation1] sm:$0x3] %v4_v0 }
   0x9   :  { %v10_v1 = vld [vmem:[#allocation1 + $0x1] sm:$0x1]   ;;  %v6_v2 = vld [vmem:[#allocation1] sm:$0x1]  }
   0xa   :  { %11 = vrot.lane.b32.xlu0 %v10_v1, %s22_s0  ;;  %8 = vst.msk [vmem:[#allocation0] sm:$0x1] %vm7_vm0, %v6_v2  }
  0x7c   :  { %v12_v3 = vpop.permute.xlu0 %11  }
  0x7d   :  { %14 = vst.msk [vmem:[#allocation0] sm:$0x1] %vm13_vm1, %v12_v3  }
  0x84   :  { %v18_v4 = vld [vmem:[#allocation0] sm:$0x1] }
  0x85   :  { %20 = vst [vmem:[%s40_s1] sm:$0x1] %v18_v4 }

// kernel: custom-call
= control target key start
LH: loop header
LB: loop body
LE: loop exit
PB: predicated region body
PF: predicated region fallthrough
CT: control target
= control target key end

     0   :  { %s6_s0 = inlined_call_operand.vmem [shape: u32[5], index: 0, kind: output, shape index: {}]  }

// kernel: moe_layer_forward.2
= control target key start
LH: loop header
LB: loop body
LE: loop exit
PB: predicated region body
PF: predicated region fallthrough
CT: control target
= control target key end

     0   :  { %vm17_vm0 = vcmask 261120   ;;  %v99_v8 = vlaneseq  ;;  %s202_s1 = inlined_call_operand.vmem [shape: f32[32,128], index: 1, kind: input, shape index: {}]   ;;  %s203_s0 = inlined_call_operand.vmem [shape: f32[16,32], index: 0, kind: input, shape index: {}]   ;;  %s204_s2 = inlined_call_operand.vmem [shape: f32[16,128], index: 2, kind: output, shape index: {}]  }
   0x1   :  { %v13_v0 = vld [vmem:[%s202_s1] sm:$0xff]  ;;  %v14_v1 = vld [vmem:[%s202_s1 + $0x8] sm:$0xff]  ;;  %v15_v2 = vld [vmem:[%s202_s1 + $0x10] sm:$0xff] }
   0x2   :  { %v147_v3 = vpack.c.bf16 %v14_v1, %v13_v0  ;;  %v16_v4 = vld [vmem:[%s202_s1 + $0x18] sm:$0xff]  ;;  %v11_v5 = vld [vmem:[%s203_s0] sm:$0xff]  ;;  %v12_v7 = vld [vmem:[%s203_s0 + $0x8] sm:$0xff]  ;;  %v100_v9 = vand.u32 127, %v99_v8 }
   0x3   :  { %v151_v6 = vpack.c.bf16 %v16_v4, %v15_v2  ;;  %144 = vmatprep.mubr.msk.f32.mxu0 %vm17_vm0, %v11_v5 }
   0x4   :  { %148 = vmatprep.subr.bf16.mxu0 %v147_v3  ;;  %vm101_vm1 = vcmp.lt.s32.totalorder %v100_v9, 4 }
   0x5   :  { %150 = vmatpush3.bf16.msra.mxu0 %v147_v3 }
   0x6   :  { %152 = vmatprep.subr.bf16.mxu0 %v151_v6 }
   0x9   :  { %154 = vmatpush3.bf16.msra.mxu0 %v151_v6 }
   0xc   :  { %145 = vmatmul.mubr.msk.f32.vlgmr.msra.gmra.mrb[0].mxu0 %vm17_vm0, %v12_v7 }
  0xdf   :  { %v146_v10 = vpop.f32.mrb[0].mxu0 }
  0xe0   :  { %v90_v11 = vpop.f32.mrb[1].mxu0  ;;  %v103_v13 = vsel %vm101_vm1, %v146_v10, -1e+30 }
  0xe1   :  { %v102_v12 = vsel %vm101_vm1, %v90_v11, -1e+30 }
  0xe2   :  { %104 = vmax.xlane.f32.xlu0 %v102_v12 }
  0xe6   :  { %106 = vmax.xlane.f32.xlu0 %v103_v13 }
 0x16f   :  { %v105_v14 = vpop.xlane.xlu0 %104 }
 0x170   :  { %v108_v15 = vsub.f32 %v102_v12, %v105_v14 }
 0x172   :  { %v110_v16 = vmul.f32 1.442695, %v108_v15 }
 0x173   :  { %v107_v17 = vpop.xlane.xlu0 %106 }
 0x174   :  { %155 = vpow2.f32 %v110_v16  ;;  %v109_v18 = vsub.f32 %v103_v13, %v107_v17 }
 0x176   :  { %v112_v19 = vmul.f32 1.442695, %v109_v18 }
 0x178   :  { %157 = vpow2.f32 %v112_v19 }
 0x17e   :  { %v156_v20 = vpop.eup %155 }
 0x17f   :  { %114 = vadd.xlane.f32.xlu1 %v156_v20 }
 0x182   :  { %v158_v21 = vpop.eup %157 }
 0x183   :  { %116 = vadd.xlane.f32.xlu1 %v158_v21 }
 0x20c   :  { %v115_v22 = vpop.xlane.xlu1 %114 }
 0x20d   :  { %159 = vrcp.f32 %v115_v22 }
 0x210   :  { %v117_v23 = vpop.xlane.xlu1 %116 }
 0x211   :  { %161 = vrcp.f32 %v117_v23 }
 0x217   :  { %v160_v24 = vpop.eup %159 }
 0x218   :  { %v119_v25 = vmul.f32 %v160_v24, %v156_v20 }
 0x21a   :  { %122 = vst [vmem:[%s204_s2] sm:$0xff] %v119_v25 }
 0x21b   :  { %v162_v26 = vpop.eup %161 }
 0x21c   :  { %v121_v27 = vmul.f32 %v162_v26, %v158_v21 }
 0x21e   :  { %123 = vst [vmem:[%s204_s2 + $0x8] sm:$0xff] %v121_v27 }

// kernel: moe_layer_forward.3
= control target key start
LH: loop header
LB: loop body
LE: loop exit
PB: predicated region body
PF: predicated region fallthrough
CT: control target
= control target key end

     0   :  { %s1921_s0 = inlined_call_operand.vmem [shape: s32[5], index: 0, kind: input, shape index: {}]   ;;  %s1922_s2 = inlined_call_operand.vmem [shape: bf16[640,32], index: 2, kind: input, shape index: {}]   ;;  %s1923_s3 = inlined_call_operand.vmem [shape: bf16[4,32,64], index: 3, kind: input, shape index: {}]   ;;  %s1924_s4 = inlined_call_operand.vmem [shape: bf16[4,64,32], index: 4, kind: input, shape index: {}]   ;;  %s1925_s5 = inlined_call_operand.vmem [shape: bf16[640,64], index: 5, kind: output, shape index: {0}]   ;;  %s1926_s6 = inlined_call_operand.vmem [shape: bf16[640,32], index: 6, kind: output, shape index: {1}]   ;;  %s1927_s1 = inlined_call_operand.vmem [shape: s32[5], index: 1, kind: input, shape index: {}]  }
   0x1   :  { %s12_s23 = sshll.u32 %s1921_s0, 4  ;;  %s16_s26 = sshll.u32 %s1927_s1, 4  ;;  %s13_s23 = int_to_ptr.vmem [resolvable:$true] %s12_s23  ;;  %s17_s26 = int_to_ptr.vmem [resolvable:$true] %s16_s26 }
   0x2   :  { %s1554_s27 = scalar_lea.vmem %s13_s23, 16  ;;  %p1559_p1 = scmp.lt.s32.totalorder %s13_s23, %s13_s23 }
   0x3   :  { %p1555_p0 = scmp.ne.s32.totalorder %s13_s23, %s1554_s27  ;;  %p1560_p2 = scmp.lt.s32.totalorder %s1554_s27, %s1554_s27 }
   0x5   :  { %p1561_p3 = por %p1560_p2, %p1559_p1 }
   0x7   :  { %p1562_p4 = pnand %p1561_p3, %p1555_p0 }
   0x9   :  { %1565 = shalt.err (!%p1562_p4)  }
   0xa   :  { %s1604_s28 = smov [#allocation3]   ;;  %s1566_s29 = scalar_lea.vmem %s17_s26, 16 }
   0xb   :  { %15 = dma.vmem_to_smem %s13_s23, 16, %s1604_s28, [#allocation2] }
   0xc   :  { %p1567_p5 = scmp.ne.s32.totalorder %s17_s26, %s1566_s29  ;;  %p1571_p6 = scmp.lt.s32.totalorder %s17_s26, %s17_s26 }
   0xd   :  { %p1572_p7 = scmp.lt.s32.totalorder %s1566_s29, %s1566_s29 }
   0xf   :  { %p1573_p8 = por %p1572_p7, %p1571_p6 }
  0x11   :  { %p1574_p9 = pnand %p1573_p8, %p1567_p5 }
  0x13   :  { %1577 = shalt.err (!%p1574_p9)  }
  0x14   :  { %s1605_s0 = smov [#allocation4]  }
  0x15   :  { %19 = dma.vmem_to_smem %s17_s26, 16, %s1605_s0, [#allocation2] }
  0x16   :  { %1590 = dma.done.wait [#allocation2], 32 }
  0x17   :  { %1591 = vsyncadd [#allocation2], 4294967264 }
  0x18   :  { %21 = sfence }
  0x19   :  { %s1647_s1 = smov 0   ;;  %s1649_s30 = smov 0  }
  0x1a   :  { %s1651_s7 = smov 0  }
  0x1b LB: > { %s39_s8 = sadd.s32 1, %s1598_s30  ;;  %p1274_p10 = scmp.ge.s32.totalorder %s1602_s7, 1  ;;  %s1602_s7 = sphi %s1651_s7, %s27_s7   ;;  %s1598_s30 = sphi %s1649_s30, %s1929_s30   ;;  %s1594_s1 = sphi %s1647_s1, %s1928_s1  }
  0x1c   : > { %p41_p11 = scmp.ge.s32.totalorder %s39_s8, 5  ;;  %p232_p12 = scmp.lt.s32.totalorder %s1602_s7, 6 }
  0x1e   : > { %s1931_s8 = smov (%p41_p11, %s39_s8), 0  ;;  %p233_p13 = pnand %p1274_p10, %p232_p12 }
  0x1f   : > { %s1275_s9 = sshll.u32 (!%p233_p13), %s1594_s1, 4  ;;  %s291_s10 = sld [smem:[#allocation3 + %s1594_s1]] (!%p233_p13) }
  0x20   : > { %236 = sbr.rel (%p233_p13) target bundleno = 551 (0x227), region = 32  ;;  %p286_p0 = scmp.lt.s32.totalorder (!%p233_p13), %s1275_s9, 79 }
  0x21   : > { %s301_s11 = sld [smem:[#allocation3 + %s1594_s1]] (!%p233_p13) }
  0x22   : > { %s329_s12 = sld [smem:[#allocation4 + %s1594_s1]] (!%p233_p13) }
  0x25   : > { %p292_p1 = scmp.lt.s32.totalorder (!%p233_p13), %s291_s10, 3 }
  0x27   : > { %s1933_s9 = smov (!%p286_p0, %s1275_s9), 79  ;;  %p303_p2 = scmp.lt.s32.totalorder %s301_s11, 3 }
  0x28   : > { %s1276_s13 = sshll.u32 %s1933_s9, 2  ;;  %s1935_s10 = smov (!%p292_p1, %s291_s10), 3 }
  0x29   : > { %s1668_s16 = scalar_lea.vmem %s1922_s2, %s1276_s13  ;;  %s1673_s19 = scalar_lea.vmem %s1925_s5, %s1276_s13 }
  0x2a   : > { %s1937_s11 = smov (!%p303_p2, %s301_s11), 3  ;;  %s1366_s20 = sshll.u32 %s1935_s10, 4 }
  0x2b   : > { %s1678_s23 = scalar_lea.vmem %s1926_s6, %s1276_s13  ;;  %s299_s26 = scalar_lea.vmem %s1923_s3, %s1366_s20 }
  0x2c   : > { %s1367_s27 = sshll.u32 %s1937_s11, 5  ;;  %p1285_p3 = scmp.le.s32.totalorder %s329_s12, 0 }
  0x2d   : > { %s1686_s0 = scalar_lea.vmem %s1924_s4, %s1367_s27  ;;  %v1508_v0 = vld [vmem:[%s299_s26] sm:$0xff] (!%p1285_p3)   ;;  %v1509_v1 = vld [vmem:[%s299_s26 + $0x8] sm:$0xff] (!%p1285_p3)   ;;  %vm414_vm0 = vcmask (!%p1285_p3), 261120   ;;  %v1512_v4 = vld [vmem:[%s1668_s16 + $0x10] sm:$0xff] (!%p1285_p3)   ;;  %vm744_vm1 = vcmask (!%p1285_p3), 519168   ;;  %vm785_vm2 = vcmask (!%p1285_p3), 523264  }
  0x2e   : > { %333 = sbr.rel (%p1285_p3) target bundleno = 551 (0x227), region = 36  ;;  %1438 = vmatprep.subr.bf16.mxu0 (!%p1285_p3), %v1508_v0  ;;  %v1510_v2 = vld [vmem:[%s1668_s16] sm:$0xff] (!%p1285_p3)   ;;  %v1511_v3 = vld [vmem:[%s1668_s16 + $0x8] sm:$0xff] (!%p1285_p3)   ;;  %v1513_v5 = vld [vmem:[%s1668_s16 + $0x18] sm:$0xff] (!%p1285_p3)   ;;  %vm975_vm3 = vcmask (!%p1285_p3), 257024  }
  0x2f   : > { %1439 = vmatpush3.bf16.msra.mxu0 (!%p1285_p3), %v1508_v0  ;;  %1442 = vmatprep.mubr.msk.bf16.mxu0 (!%p1285_p3), %vm414_vm0, %v1510_v2  ;;  %v1514_v6 = vld [vmem:[%s1668_s16 + $0x20] sm:$0xff] (!%p1285_p3)   ;;  %v1515_v7 = vld [vmem:[%s1668_s16 + $0x28] sm:$0xff] (!%p1285_p3)   ;;  %v1516_v8 = vld [vmem:[%s1668_s16 + $0x30] sm:$0xff] (!%p1285_p3)  }
  0x30   : > { %1440 = vmatprep.subr.bf16.mxu0 (!%p1285_p3), %v1509_v1  ;;  %v1517_v9 = vld [vmem:[%s1668_s16 + $0x38] sm:$0xff] (!%p1285_p3)   ;;  %v1518_v10 = vld [vmem:[%s1686_s0] sm:$0xff] (!%p1285_p3)   ;;  %v1519_v11 = vld [vmem:[%s1686_s0 + $0x8] sm:$0xff] (!%p1285_p3)  }
  0x31   : > { %1458 = vmatprep.subr.bf16.mxu1 (!%p1285_p3), %v1518_v10  ;;  %v1520_v12 = vld [vmem:[%s1686_s0 + $0x10] sm:$0xff] (!%p1285_p3)   ;;  %v1521_v13 = vld [vmem:[%s1686_s0 + $0x18] sm:$0xff] (!%p1285_p3)  }
  0x32   : > { %1459 = vmatpush3.bf16.msra.mxu1 (!%p1285_p3), %v1518_v10 }
  0x33   : > { %1441 = vmatpush3.bf16.msra.mxu0 (!%p1285_p3), %v1509_v1  ;;  %1460 = vmatprep.subr.bf16.mxu1 (!%p1285_p3), %v1519_v11 }
  0x36   : > { %1443 = vmatmul.mubr.msk.bf16.vlgmr.msra.gmra.mrb[0].mxu0 %vm414_vm0, %v1511_v3  ;;  %1461 = vmatpush3.bf16.msra.mxu1 %v1519_v11 }
  0x37   : > { %1446 = vmatprep.mubr.msk.bf16.mxu0 %vm414_vm0, %v1512_v4  ;;  %1462 = vmatprep.subr.bf16.mxu1 %v1520_v12 }
  0x3a   : > { %1463 = vmatpush3.bf16.msra.mxu1 %v1520_v12 }
  0x3b   : > { %1464 = vmatprep.subr.bf16.mxu1 %v1521_v13 }
  0x3e   : > { %1447 = vmatmul.mubr.msk.bf16.gmra.mrb[4].mxu0 %vm414_vm0, %v1513_v5  ;;  %1465 = vmatpush3.bf16.msra.mxu1 %v1521_v13 }
  0x3f   : > { %1450 = vmatprep.mubr.msk.bf16.mxu0 %vm414_vm0, %v1514_v6 }
  0x46   : > { %1451 = vmatmul.mubr.msk.bf16.gmra.mrb[8].mxu0 %vm414_vm0, %v1515_v7 }
  0x47   : > { %1454 = vmatprep.mubr.msk.bf16.mxu0 %vm414_vm0, %v1516_v8 }
  0x4e   : > { %1455 = vmatmul.mubr.msk.bf16.gmra.mrb[12].mxu0 %vm414_vm0, %v1517_v9 }
 0x109   : > { %v1708_v14 = vpop.f32.mrb[0].mxu0 }
 0x10a   : > { %v538_v15 = vmul.f32 %v1708_v14, %v1708_v14  ;;  %v1712_v16 = vpop.f32.mrb[1].mxu0 }
 0x10b   : > { %v536_v17 = vmul.f32 %v1712_v16, %v1712_v16  ;;  %v1716_v18 = vpop.f32.mrb[2].mxu0 }
 0x10c   : > { %v554_v19 = vmul.f32 %v1708_v14, %v538_v15  ;;  %v539_v20 = vmul.f32 %v1716_v18, %v1716_v18  ;;  %v1721_v21 = vpop.f32.mrb[3].mxu0 }
 0x10d   : > { %v552_v22 = vmul.f32 %v536_v17, %v1712_v16  ;;  %v537_v23 = vmul.f32 %v1721_v21, %v1721_v21 }
 0x10e   : > { %v570_v24 = vmul.f32 0.044715, %v554_v19  ;;  %v555_v25 = vmul.f32 %v1716_v18, %v539_v20 }
 0x10f   : > { %v568_v26 = vmul.f32 0.044715, %v552_v22  ;;  %v553_v27 = vmul.f32 %v537_v23, %v1721_v21 }
 0x110   : > { %v586_v28 = vadd.f32 %v1708_v14, %v570_v24  ;;  %v571_v29 = vmul.f32 0.044715, %v555_v25 }
 0x111   : > { %v584_v30 = vadd.f32 %v568_v26, %v1712_v16  ;;  %v569_v31 = vmul.f32 0.044715, %v553_v27  ;;  %v1730_v32 = vpop.f32.mrb[4].mxu0 }
 0x112   : > { %v602_v33 = vmul.f32 0.7978846, %v586_v28  ;;  %v587_v34 = vadd.f32 %v1716_v18, %v571_v29  ;;  %v542_v35 = vmul.f32 %v1730_v32, %v1730_v32  ;;  %v1735_v36 = vpop.f32.mrb[5].mxu0 }
 0x113   : > { %v600_v37 = vmul.f32 0.7978846, %v584_v30  ;;  %v585_v38 = vadd.f32 %v569_v31, %v1721_v21  ;;  %v540_v39 = vmul.f32 %v1735_v36, %v1735_v36  ;;  %v1740_v40 = vpop.f32.mrb[6].mxu0 }
 0x114   : > { %1522 = vtanh.f32 %v602_v33  ;;  %v603_v41 = vmul.f32 0.7978846, %v587_v34  ;;  %v558_v42 = vmul.f32 %v1730_v32, %v542_v35  ;;  %v543_v43 = vmul.f32 %v1740_v40, %v1740_v40  ;;  %v1745_v44 = vpop.f32.mrb[7].mxu0 }
 0x115   : > { %1524 = vtanh.f32 %v600_v37  ;;  %v601_v45 = vmul.f32 0.7978846, %v585_v38  ;;  %v556_v46 = vmul.f32 %v540_v39, %v1735_v36  ;;  %v541_v47 = vmul.f32 %v1745_v44, %v1745_v44 }
 0x116   : > { %1526 = vtanh.f32 %v603_v41  ;;  %v574_v48 = vmul.f32 0.044715, %v558_v42  ;;  %v559_v49 = vmul.f32 %v1740_v40, %v543_v43 }
 0x117   : > { %1528 = vtanh.f32 %v601_v45  ;;  %v572_v50 = vmul.f32 0.044715, %v556_v46  ;;  %v557_v51 = vmul.f32 %v541_v47, %v1745_v44 }
 0x118   : > { %v590_v52 = vadd.f32 %v1730_v32, %v574_v48  ;;  %v575_v53 = vmul.f32 0.044715, %v559_v49 }
 0x119   : > { %v588_v54 = vadd.f32 %v572_v50, %v1735_v36  ;;  %v573_v55 = vmul.f32 0.044715, %v557_v51  ;;  %v1754_v56 = vpop.f32.mrb[8].mxu0 }
 0x11a   : > { %v606_v57 = vmul.f32 0.7978846, %v590_v52  ;;  %v591_v58 = vadd.f32 %v1740_v40, %v575_v53  ;;  %v546_v59 = vmul.f32 %v1754_v56, %v1754_v56  ;;  %v1759_v60 = vpop.f32.mrb[9].mxu0 }
 0x11b   : > { %v604_v61 = vmul.f32 0.7978846, %v588_v54  ;;  %v589_v62 = vadd.f32 %v573_v55, %v1745_v44  ;;  %v544_v63 = vmul.f32 %v1759_v60, %v1759_v60  ;;  %v1764_v0 = vpop.f32.mrb[10].mxu0 }
 0x11c   : > { %1530 = vtanh.f32 %v606_v57  ;;  %v607_v1 = vmul.f32 0.7978846, %v591_v58  ;;  %v562_v2 = vmul.f32 %v1754_v56, %v546_v59  ;;  %v547_v3 = vmul.f32 %v1764_v0, %v1764_v0  ;;  %v1769_v4 = vpop.f32.mrb[11].mxu0 }
 0x11d   : > { %1532 = vtanh.f32 %v604_v61  ;;  %v605_v5 = vmul.f32 0.7978846, %v589_v62  ;;  %v560_v6 = vmul.f32 %v544_v63, %v1759_v60  ;;  %v545_v7 = vmul.f32 %v1769_v4, %v1769_v4 }
 0x11e   : > { %v1523_v8 = vpop.eup %1522  ;;  %1534 = vtanh.f32 %v607_v1  ;;  %v578_v9 = vmul.f32 0.044715, %v562_v2  ;;  %v563_v10 = vmul.f32 %v1764_v0, %v547_v3 }
 0x11f   : > { %v1525_v11 = vpop.eup %1524  ;;  %v634_v12 = vadd.f32 1.0, %v1523_v8  ;;  %1536 = vtanh.f32 %v605_v5  ;;  %v576_v13 = vmul.f32 0.044715, %v560_v6  ;;  %v561_v15 = vmul.f32 %v545_v7, %v1769_v4 }
 0x120   : > { %v1527_v17 = vpop.eup %1526  ;;  %v594_v19 = vadd.f32 %v1754_v56, %v578_v9  ;;  %v579_v20 = vmul.f32 0.044715, %v563_v10  ;;  %v632_v22 = vadd.f32 1.0, %v1525_v11 }
 0x121   : > { %v1529_v23 = vpop.eup %1528  ;;  %v650_v24 = vmul.f32 0.5, %v634_v12  ;;  %v635_v25 = vadd.f32 1.0, %v1527_v17  ;;  %v592_v26 = vadd.f32 %v576_v13, %v1759_v60  ;;  %v577_v27 = vmul.f32 0.044715, %v561_v15  ;;  %v1778_v28 = vpop.f32.mrb[12].mxu0 }
 0x122   : > { %v610_v29 = vmul.f32 0.7978846, %v594_v19  ;;  %v595_v30 = vadd.f32 %v1764_v0, %v579_v20  ;;  %v550_v31 = vmul.f32 %v1778_v28, %v1778_v28  ;;  %v1783_v33 = vpop.f32.mrb[13].mxu0  ;;  %v633_v34 = vadd.f32 1.0, %v1529_v23 }
 0x123   : > { %v1786_v35 = vmul.f32 %v1708_v14, %v650_v24  ;;  %v651_v37 = vmul.f32 0.5, %v635_v25  ;;  %v608_v38 = vmul.f32 0.7978846, %v592_v26  ;;  %v593_v39 = vadd.f32 %v577_v27, %v1769_v4  ;;  %v1789_v41 = vpop.f32.mrb[14].mxu0 }
 0x124   : > { %1538 = vtanh.f32 %v610_v29  ;;  %v611_v42 = vmul.f32 0.7978846, %v595_v30  ;;  %v566_v43 = vmul.f32 %v1778_v28, %v550_v31  ;;  %v548_v45 = vmul.f32 %v1783_v33, %v1783_v33  ;;  %v1794_v46 = vpop.f32.mrb[15].mxu0 }
 0x125   : > { %v1370_v14 = vpack.c.bf16 %v1786_v35, %v1786_v35  ;;  %v1799_v47 = vmul.f32 %v1716_v18, %v651_v37  ;;  %1540 = vtanh.f32 %v608_v38  ;;  %v609_v48 = vmul.f32 0.7978846, %v593_v39 }
 0x126   : > { %v1531_v49 = vpop.eup %1530  ;;  %1542 = vtanh.f32 %v611_v42  ;;  %v582_v50 = vmul.f32 0.044715, %v566_v43  ;;  %v564_v51 = vmul.f32 %v548_v45, %v1783_v33  ;;  %v551_v52 = vmul.f32 %v1789_v41, %v1789_v41 }
 0x127   : > { %v1533_v53 = vpop.eup %1532  ;;  %747 = vst.msk [vmem:[%s1673_s19 + $0x8] sm:$0xf] %vm744_vm1, %v1370_v14  ;;  %v1371_v54 = vpack.c.bf16 %v1799_v47, %v1799_v47  ;;  %v638_v55 = vadd.f32 1.0, %v1531_v49  ;;  %1544 = vtanh.f32 %v609_v48  ;;  %v549_v18 = vmul.f32 %v1794_v46, %v1794_v46 }
 0x128   : > { %v1535_v57 = vpop.eup %1534  ;;  %v636_v58 = vadd.f32 1.0, %v1533_v53  ;;  %v598_v59 = vadd.f32 %v1778_v28, %v582_v50  ;;  %v580_v61 = vmul.f32 0.044715, %v564_v51  ;;  %v567_v62 = vmul.f32 %v1789_v41, %v551_v52 }
 0x129   : > { %v1537_v63 = vpop.eup %1536  ;;  %748 = vst.msk [vmem:[%s1673_s19 + $0xc] sm:$0xf] %vm744_vm1, %v1371_v54  ;;  %v654_v1 = vmul.f32 0.5, %v638_v55  ;;  %v639_v2 = vadd.f32 1.0, %v1535_v57  ;;  %v565_v3 = vmul.f32 %v549_v18, %v1794_v46  ;;  %v648_v5 = vmul.f32 0.5, %v632_v22 }
 0x12a   : > { %v652_v6 = vmul.f32 0.5, %v636_v58  ;;  %v637_v7 = vadd.f32 1.0, %v1537_v63  ;;  %v614_v8 = vmul.f32 0.7978846, %v598_v59  ;;  %v596_v9 = vadd.f32 %v580_v61, %v1783_v33 }
 0x12b   : > { %v1817_v10 = vmul.f32 %v1730_v32, %v654_v1  ;;  %v655_v11 = vmul.f32 0.5, %v639_v2  ;;  %v583_v12 = vmul.f32 0.044715, %v567_v62  ;;  %v581_v13 = vmul.f32 0.044715, %v565_v3 }
 0x12c   : > { %v668_v15 = vmul.f32 %v652_v6, %v1735_v36  ;;  %v653_v17 = vmul.f32 0.5, %v637_v7  ;;  %1546 = vtanh.f32 %v614_v8  ;;  %v612_v19 = vmul.f32 0.7978846, %v596_v9 }
 0x12d   : > { %v1374_v20 = vpack.c.bf16 %v1817_v10, %v1817_v10  ;;  %v1823_v22 = vmul.f32 %v1740_v40, %v655_v11  ;;  %v599_v23 = vadd.f32 %v1789_v41, %v583_v12  ;;  %v597_v32 = vadd.f32 %v581_v13, %v1794_v46 }
 0x12e   : > { %v1539_v24 = vpop.eup %1538  ;;  %v1372_v25 = vpack.c.bf16 %v668_v15, %v668_v15  ;;  %v669_v26 = vmul.f32 %v653_v17, %v1745_v44  ;;  %1548 = vtanh.f32 %v612_v19  ;;  %v649_v36 = vmul.f32 0.5, %v633_v34 }
 0x12f   : > { %v1541_v27 = vpop.eup %1540  ;;  %751 = vst.msk [vmem:[%s1673_s19 + $0x18] sm:$0xf] %vm744_vm1, %v1374_v20  ;;  %v1375_v29 = vpack.c.bf16 %v1823_v22, %v1823_v22  ;;  %v642_v40 = vadd.f32 1.0, %v1539_v24  ;;  %v615_v30 = vmul.f32 0.7978846, %v599_v23  ;;  %v664_v44 = vmul.f32 %v648_v5, %v1712_v16 }
 0x130   : > { %v613_v31 = vmul.f32 0.7978846, %v597_v32  ;;  %v1543_v37 = vpop.eup %1542  ;;  %749 = vst.msk [vmem:[%s1673_s19 + $0x10] sm:$0xf] %vm744_vm1, %v1372_v25  ;;  %v1373_v38 = vpack.c.bf16 %v669_v26, %v669_v26  ;;  %v640_v39 = vadd.f32 1.0, %v1541_v27  ;;  %v665_v42 = vmul.f32 %v649_v36, %v1721_v21 }
 0x131   : > { %v1545_v34 = vpop.eup %1544  ;;  %752 = vst.msk [vmem:[%s1673_s19 + $0x1c] sm:$0xf] %vm744_vm1, %v1375_v29  ;;  %v658_v43 = vmul.f32 0.5, %v642_v40  ;;  %v643_v45 = vadd.f32 1.0, %v1543_v37  ;;  %1550 = vtanh.f32 %v615_v30  ;;  %v681_v14 = vpack.c.bf16 %v1799_v47, %v1786_v35 }
 0x132   : > { %750 = vst.msk [vmem:[%s1673_s19 + $0x14] sm:$0xf] %vm744_vm1, %v1373_v38  ;;  %v656_v48 = vmul.f32 0.5, %v640_v39  ;;  %v641_v49 = vadd.f32 1.0, %v1545_v34  ;;  %1552 = vtanh.f32 %v613_v31  ;;  %v680_v50 = vpack.c.bf16 %v665_v42, %v664_v44 }
 0x133   : > { %v674_v16 = vmul.f32 %v1754_v56, %v658_v43  ;;  %v659_v21 = vmul.f32 0.5, %v643_v45  ;;  %v1368_v51 = vpack.c.bf16 %v664_v44, %v664_v44  ;;  %v1369_v52 = vpack.c.bf16 %v665_v42, %v665_v42 }
 0x134   : > { %v672_v53 = vmul.f32 %v656_v48, %v1759_v60  ;;  %v657_v54 = vmul.f32 0.5, %v641_v49  ;;  %1466 = vmatprep.mubr.msk.bf16.mxu1 %vm785_vm2, %v680_v50  ;;  %v682_v35 = vpack.c.bf16 %v669_v26, %v668_v15  ;;  %v683_v47 = vpack.c.bf16 %v1823_v22, %v1817_v10 }
 0x135   : > { %v1378_v55 = vpack.c.bf16 %v674_v16, %v674_v16  ;;  %v675_v18 = vmul.f32 %v1764_v0, %v659_v21  ;;  %745 = vst.msk [vmem:[%s1673_s19] sm:$0xf] %vm744_vm1, %v1368_v51  ;;  %746 = vst.msk [vmem:[%s1673_s19 + $0x4] sm:$0xf] %vm744_vm1, %v1369_v52  ;;  %1467 = vmatmul.mubr.msk.bf16.vlgmr.msra.gmra.mrb[0].mxu1 %vm785_vm2, %v681_v14 }
 0x136   : > { %v1547_v56 = vpop.eup %1546  ;;  %v1376_v60 = vpack.c.bf16 %v672_v53, %v672_v53  ;;  %v673_v57 = vmul.f32 %v657_v54, %v1769_v4  ;;  %1470 = vmatprep.mubr.msk.bf16.mxu1 %vm785_vm2, %v682_v35 }
 0x137   : > { %755 = vst.msk [vmem:[%s1673_s19 + $0x28] sm:$0xf] %vm744_vm1, %v1378_v55  ;;  %v1379_v58 = vpack.c.bf16 %v675_v18, %v675_v18  ;;  %v646_v59 = vadd.f32 1.0, %v1547_v56  ;;  %v685_v61 = vpack.c.bf16 %v675_v18, %v674_v16 }
 0x138   : > { %v1549_v0 = vpop.eup %1548  ;;  %753 = vst.msk [vmem:[%s1673_s19 + $0x20] sm:$0xf] %vm744_vm1, %v1376_v60  ;;  %v1377_v62 = vpack.c.bf16 %v673_v57, %v673_v57  ;;  %v684_v63 = vpack.c.bf16 %v673_v57, %v672_v53 }
 0x139   : > { %756 = vst.msk [vmem:[%s1673_s19 + $0x2c] sm:$0xf] %vm744_vm1, %v1379_v58  ;;  %v662_v1 = vmul.f32 0.5, %v646_v59  ;;  %v644_v2 = vadd.f32 1.0, %v1549_v0 }
 0x13a   : > { %754 = vst.msk [vmem:[%s1673_s19 + $0x24] sm:$0xf] %vm744_vm1, %v1377_v62 }
 0x13b   : > { %v1551_v4 = vpop.eup %1550  ;;  %v678_v3 = vmul.f32 %v1778_v28, %v662_v1  ;;  %v660_v5 = vmul.f32 0.5, %v644_v2 }
 0x13c   : > { %v1553_v6 = vpop.eup %1552  ;;  %v647_v7 = vadd.f32 1.0, %v1551_v4 }
 0x13d   : > { %v1382_v8 = vpack.c.bf16 %v678_v3, %v678_v3  ;;  %v676_v9 = vmul.f32 %v660_v5, %v1783_v33  ;;  %v645_v10 = vadd.f32 1.0, %v1553_v6  ;;  %1471 = vmatmul.mubr.msk.bf16.gmra.mrb[4].mxu1 %vm785_vm2, %v683_v47 }
 0x13e   : > { %v663_v11 = vmul.f32 0.5, %v647_v7  ;;  %1474 = vmatprep.mubr.msk.bf16.mxu1 %vm785_vm2, %v684_v63 }
 0x13f   : > { %759 = vst.msk [vmem:[%s1673_s19 + $0x38] sm:$0xf] %vm744_vm1, %v1382_v8  ;;  %v1380_v12 = vpack.c.bf16 %v676_v9, %v676_v9  ;;  %v661_v13 = vmul.f32 0.5, %v645_v10 }
 0x140   : > { %v679_v28 = vmul.f32 %v1789_v41, %v663_v11 }
 0x141   : > { %757 = vst.msk [vmem:[%s1673_s19 + $0x30] sm:$0xf] %vm744_vm1, %v1380_v12  ;;  %v677_v15 = vmul.f32 %v661_v13, %v1794_v46 }
 0x142   : > { %v1383_v17 = vpack.c.bf16 %v679_v28, %v679_v28  ;;  %v687_v33 = vpack.c.bf16 %v679_v28, %v678_v3 }
 0x143   : > { %v686_v19 = vpack.c.bf16 %v677_v15, %v676_v9  ;;  %v1381_v20 = vpack.c.bf16 %v677_v15, %v677_v15 }
 0x144   : > { %760 = vst.msk [vmem:[%s1673_s19 + $0x3c] sm:$0xf] %vm744_vm1, %v1383_v17 }
 0x145   : > { %758 = vst.msk [vmem:[%s1673_s19 + $0x34] sm:$0xf] %vm744_vm1, %v1381_v20  ;;  %1475 = vmatmul.mubr.msk.bf16.gmra.mrb[8].mxu1 %vm785_vm2, %v685_v61 }
 0x146   : > { %1478 = vmatprep.mubr.msk.bf16.mxu1 %vm785_vm2, %v686_v19 }
 0x14d   : > { %1479 = vmatmul.mubr.msk.bf16.gmra.mrb[12].mxu1 %vm785_vm2, %v687_v33 }
 0x208   : > { %v1468_v41 = vpop.f32.mrb[0].mxu1 }
 0x209   : > { %v1386_v46 = vpack.c.bf16 %v1468_v41, %v1468_v41  ;;  %v844_v22 = vpop.f32.mrb[1].mxu1 }
 0x20a   : > { %v1384_v23 = vpack.c.bf16 %v844_v22, %v844_v22  ;;  %v1469_v32 = vpop.f32.mrb[2].mxu1 }
 0x20b   : > { %978 = vst.msk [vmem:[%s1678_s23 + $0x8] sm:$0xf] %vm975_vm3, %v1386_v46  ;;  %v1387_v24 = vpack.c.bf16 %v1469_v32, %v1469_v32  ;;  %v847_v25 = vpop.f32.mrb[3].mxu1 }
 0x20c   : > { %976 = vst.msk [vmem:[%s1678_s23] sm:$0xf] %vm975_vm3, %v1384_v23  ;;  %v1385_v26 = vpack.c.bf16 %v847_v25, %v847_v25 }
 0x20d   : > { %979 = vst.msk [vmem:[%s1678_s23 + $0xc] sm:$0xf] %vm975_vm3, %v1387_v24 }
 0x20e   : > { %977 = vst.msk [vmem:[%s1678_s23 + $0x4] sm:$0xf] %vm975_vm3, %v1385_v26 }
 0x210   : > { %v1472_v36 = vpop.f32.mrb[4].mxu1 }
 0x211   : > { %v1390_v27 = vpack.c.bf16 %v1472_v36, %v1472_v36  ;;  %v860_v29 = vpop.f32.mrb[5].mxu1 }
 0x212   : > { %v1388_v40 = vpack.c.bf16 %v860_v29, %v860_v29  ;;  %v1473_v30 = vpop.f32.mrb[6].mxu1 }
 0x213   : > { %982 = vst.msk [vmem:[%s1678_s23 + $0x18] sm:$0xf] %vm975_vm3, %v1390_v27  ;;  %v1391_v31 = vpack.c.bf16 %v1473_v30, %v1473_v30  ;;  %v863_v37 = vpop.f32.mrb[7].mxu1 }
 0x214   : > { %980 = vst.msk [vmem:[%s1678_s23 + $0x10] sm:$0xf] %vm975_vm3, %v1388_v40  ;;  %v1389_v38 = vpack.c.bf16 %v863_v37, %v863_v37 }
 0x215   : > { %983 = vst.msk [vmem:[%s1678_s23 + $0x1c] sm:$0xf] %vm975_vm3, %v1391_v31 }
 0x216   : > { %981 = vst.msk [vmem:[%s1678_s23 + $0x14] sm:$0xf] %vm975_vm3, %v1389_v38 }
 0x218   : > { %v1476_v39 = vpop.f32.mrb[8].mxu1 }
 0x219   : > { %v1394_v44 = vpack.c.bf16 %v1476_v39, %v1476_v39  ;;  %v876_v42 = vpop.f32.mrb[9].mxu1 }
 0x21a   : > { %v1392_v34 = vpack.c.bf16 %v876_v42, %v876_v42  ;;  %v1477_v43 = vpop.f32.mrb[10].mxu1 }
 0x21b   : > { %986 = vst.msk [vmem:[%s1678_s23 + $0x28] sm:$0xf] %vm975_vm3, %v1394_v44  ;;  %v1395_v45 = vpack.c.bf16 %v1477_v43, %v1477_v43  ;;  %v879_v14 = vpop.f32.mrb[11].mxu1 }
 0x21c   : > { %984 = vst.msk [vmem:[%s1678_s23 + $0x20] sm:$0xf] %vm975_vm3, %v1392_v34  ;;  %v1393_v48 = vpack.c.bf16 %v879_v14, %v879_v14 }
 0x21d   : > { %987 = vst.msk [vmem:[%s1678_s23 + $0x2c] sm:$0xf] %vm975_vm3, %v1395_v45 }
 0x21e   : > { %985 = vst.msk [vmem:[%s1678_s23 + $0x24] sm:$0xf] %vm975_vm3, %v1393_v48 }
 0x220   : > { %v1480_v49 = vpop.f32.mrb[12].mxu1 }
 0x221   : > { %v1398_v50 = vpack.c.bf16 %v1480_v49, %v1480_v49  ;;  %v892_v16 = vpop.f32.mrb[13].mxu1 }
 0x222   : > { %v1396_v21 = vpack.c.bf16 %v892_v16, %v892_v16  ;;  %v1481_v51 = vpop.f32.mrb[14].mxu1 }
 0x223   : > { %990 = vst.msk [vmem:[%s1678_s23 + $0x38] sm:$0xf] %vm975_vm3, %v1398_v50  ;;  %v1399_v52 = vpack.c.bf16 %v1481_v51, %v1481_v51  ;;  %v895_v53 = vpop.f32.mrb[15].mxu1 }
 0x224   : > { %988 = vst.msk [vmem:[%s1678_s23 + $0x30] sm:$0xf] %vm975_vm3, %v1396_v21  ;;  %v1397_v54 = vpack.c.bf16 %v895_v53, %v895_v53 }
 0x225   : > { %991 = vst.msk [vmem:[%s1678_s23 + $0x3c] sm:$0xf] %vm975_vm3, %v1399_v52 }
 0x226   : > { %989 = vst.msk [vmem:[%s1678_s23 + $0x34] sm:$0xf] %vm975_vm3, %v1397_v54 }
 0x227 PF: > { %s27_s7 = sadd.s32 1, %s1602_s7   ;;  %s1928_s1 = smov %s1598_s30 }
 0x228   : > { %p24_p4 = scmp.ge.s32.totalorder %s27_s7, 7   ;;  %s1929_s30 = smov %s1931_s8 }
 0x22a   :  { %26 = sbr.rel (!%p24_p4) target bundleno = 27 (0x1b), region = 92 }

</bundles_post_ra>
